<compile_context>
chip_gen: v7x
topology: tpu7x:2x2x1
jax: 0.10.0
libtpu: 0.0.40
codegen_flags: <defaults>
</compile_context>

<pallas_src>
import functools

import jax
import jax.numpy as jnp
from jax import lax
from jax.experimental import pallas as pl
from jax.experimental.pallas import tpu as pltpu

LANE = 128


def _round_up(x, m):
    return ((x + m - 1) // m) * m


# ----------------------------- JAX glue (sampling / grouping) -----------------------------

def square_distance(src, dst):
    # src [B,N,C], dst [B,M,C] -> [B,N,M]
    dist = -2.0 * jnp.einsum('bnc,bmc->bnm', src, dst)
    dist = dist + jnp.sum(src ** 2, -1)[:, :, None]
    dist = dist + jnp.sum(dst ** 2, -1)[:, None, :]
    return dist


def farthest_point_sample(xyz, npoint, key):
    # xyz [B,N,3] -> [B,npoint]  (torch.randint start replaced by a fixed PRNG key)
    B, N, _ = xyz.shape
    farthest0 = jax.random.randint(key, (B,), 0, N)
    distance0 = jnp.full((B, N), 1e10, dtype=xyz.dtype)
    batch_idx = jnp.arange(B)
    centroids0 = jnp.zeros((B, npoint), dtype=jnp.int32)

    def body(i, carry):
        centroids, distance, farthest = carry
        centroids = centroids.at[:, i].set(farthest.astype(jnp.int32))
        centroid = xyz[batch_idx, farthest][:, None, :]           # [B,1,3]
        dist = jnp.sum((xyz - centroid) ** 2, -1)                 # [B,N]
        distance = jnp.minimum(distance, dist)
        farthest = jnp.argmax(distance, -1)
        return centroids, distance, farthest

    centroids, _, _ = lax.fori_loop(0, npoint, body, (centroids0, distance0, farthest0))
    return centroids


def index_points(points, idx):
    # points [B,N,C], idx [B,...] -> [B,...,C]
    return jax.vmap(lambda p, i: p[i])(points, idx)


def query_ball_point(radius, nsample, xyz, new_xyz):
    B, N, _ = xyz.shape
    S = new_xyz.shape[1]
    sqrdists = square_distance(new_xyz, xyz)                      # [B,S,N]
    group_idx = jnp.broadcast_to(jnp.arange(N, dtype=jnp.int32)[None, None, :], (B, S, N))
    group_idx = jnp.where(sqrdists > radius ** 2, N, group_idx)
    # nsample smallest indices (== sort ascending + take first nsample) via top_k, no full sort.
    neg_vals, _ = lax.top_k(-group_idx, nsample)                  # [B,S,nsample]
    group_idx = -neg_vals
    group_first = jnp.broadcast_to(group_idx[:, :, :1], group_idx.shape)
    group_idx = jnp.where(group_idx == N, group_first, group_idx)
    # In practice the centroid itself is within radius, so no sentinel survives; clamp defensively.
    group_idx = jnp.minimum(group_idx, N - 1)
    return group_idx                                              # [B,S,nsample]


def sample_and_group(npoint, radius, nsample, xyz, points, key):
    B, N, C = xyz.shape
    fps_idx = farthest_point_sample(xyz, npoint, key)             # [B,S]
    new_xyz = index_points(xyz, fps_idx)                          # [B,S,3]
    idx = query_ball_point(radius, nsample, xyz, new_xyz)         # [B,S,K]
    grouped_xyz = index_points(xyz, idx)                          # [B,S,K,3]
    grouped_xyz_norm = grouped_xyz - new_xyz[:, :, None, :]
    if points is not None:
        grouped_points = index_points(points, idx)                # [B,S,K,D]
        new_points = jnp.concatenate([grouped_xyz_norm, grouped_points], axis=-1)
    else:
        new_points = grouped_xyz_norm
    return new_xyz, new_points                                    # [B,S,3], [B,S,K,3+D]


def sample_and_group_all(xyz, points):
    B, N, C = xyz.shape
    new_xyz = jnp.zeros((B, 1, C), xyz.dtype)
    grouped_xyz = xyz[:, None, :, :]
    if points is not None:
        new_points = jnp.concatenate([grouped_xyz, points[:, None, :, :]], axis=-1)
    else:
        new_points = grouped_xyz
    return new_xyz, new_points


# ----------------------------- Pallas kernel (hot path) -----------------------------

def _sa_mlp_kernel(num_layers, ts, k, feat_ref, *refs):
    """feat_ref: [1, ts*k, C_in_pad] bf16; refs = (w0, b0, ..., w_{L-1}, b_{L-1}, out_ref).
    w_i: bf16 [C_i_pad, C_{i+1}_pad]; b_i: f32 [1, C_{i+1}_pad]; out_ref: f32 [1, ts, C_out_pad].
    """
    out_ref = refs[-1]
    wb = refs[:-1]
    x = feat_ref[0]                                               # (ts*k, C_in_pad), bf16
    for i in range(num_layers):
        w = wb[2 * i][...]                                        # bf16
        b = wb[2 * i + 1][...]                                    # f32
        y = jnp.dot(x, w, preferred_element_type=jnp.float32) + b # MXU bf16, f32 accumulate
        y = jnp.maximum(y, 0.0)
        x = y.astype(jnp.bfloat16) if i + 1 < num_layers else y   # keep last layer f32 for the max
    c = x.shape[-1]
    # k is a multiple of 8, so the reshape stays tile-aligned (no relayout copy);
    # the sublane-axis max goes to the XLU (free slot relative to the MXU).
    out_ref[0] = jnp.max(x.reshape(ts, k, c), axis=1)


def pointnet_sa_mlp_max(grouped, weights, biases, c_out, *, target_rows=1024):
    """grouped: [B, S, K, C_in] f32; weights: bf16 lane-padded [Ci_pad, Cj_pad]; biases: f32 [1, Cj_pad].
    Returns [B, S, c_out] f32 (max over K of the fused MLP)."""
    B, S, K, C_in = grouped.shape
    num_layers = len(weights)
    C_in_pad = weights[0].shape[0]
    C_out_pad = weights[-1].shape[1]

    # --- K padding (duplicate last neighbor; max unchanged) -> keeps reshape tile-aligned.
    K_pad = _round_up(K, 8)
    if K_pad != K:
        pad_rows = jnp.broadcast_to(grouped[:, :, -1:, :], (B, S, K_pad - K, C_in))
        grouped = jnp.concatenate([grouped, pad_rows], axis=2)

    # --- tile over S: cap rows at ~target_rows so the largest f32 activation stays a few MiB
    #     (sized for v7x's 64 MiB per-TC VMEM; v5e/v6e have more headroom).
    ts = max(8, min(_round_up(S, 8), (target_rows // K_pad) // 8 * 8))
    S_pad = _round_up(S, ts)

    # --- pad S (zero groups; outputs sliced off), lane-pad channels, cast to bf16.
    grouped = grouped.astype(jnp.bfloat16)
    grouped = jnp.pad(grouped, ((0, 0), (0, S_pad - S), (0, 0), (0, C_in_pad - C_in)))
    feats = grouped.reshape(B, S_pad * K_pad, C_in_pad)

    tsk = ts * K_pad
    in_specs = [pl.BlockSpec((1, tsk, C_in_pad), lambda b, s: (b, s, 0))]
    args = [feats]
    for w, bias in zip(weights, biases):
        in_specs.append(pl.BlockSpec(w.shape, lambda b, s: (0, 0)))
        in_specs.append(pl.BlockSpec(bias.shape, lambda b, s: (0, 0)))
        args.append(w)
        args.append(bias)

    flops = 2 * B * S_pad * K_pad * sum(int(w.shape[0]) * int(w.shape[1]) for w in weights)
    bytes_accessed = (
        feats.size * 2
        + B * (S_pad // ts) * sum(w.size * 2 + bias.size * 4 for w, bias in zip(weights, biases))
        + B * S_pad * C_out_pad * 4
    )
    cost = pl.CostEstimate(flops=flops, transcendentals=0, bytes_accessed=bytes_accessed)

    kernel = functools.partial(_sa_mlp_kernel, num_layers, ts, K_pad)
    out = pl.pallas_call(
        kernel,
        out_shape=jax.ShapeDtypeStruct((B, S_pad, C_out_pad), jnp.float32),
        grid_spec=pltpu.PrefetchScalarGridSpec(
            num_scalar_prefetch=0,
            grid=(B, S_pad // ts),
            in_specs=in_specs,
            out_specs=pl.BlockSpec((1, ts, C_out_pad), lambda b, s: (b, s, 0)),
        ),
        compiler_params=pltpu.CompilerParams(
            dimension_semantics=("parallel", "parallel"),
            vmem_limit_bytes=48 * 1024 * 1024,
        ),
        cost_estimate=cost,
    )(*args)
    return out[:, :S, :c_out]


# ----------------------------- Module wrapper -----------------------------

class PointNetSetAbstraction:
    def __init__(self, npoint, radius, nsample, in_channel, mlp, group_all, key):
        self.npoint = npoint
        self.radius = radius
        self.nsample = nsample
        self.group_all = group_all
        last = in_channel + 3
        eps = 1e-5
        self.weights = []   # bf16, lane-padded [Ci_pad, Cj_pad]
        self.biases = []    # f32,  [1, Cj_pad]
        keys = jax.random.split(key, 2 * len(mlp))
        for i, out_c in enumerate(mlp):
            # nn.Conv2d(last, out_c, 1): weight [out_c, last, 1, 1] -> stored as [last, out_c]
            w = jax.random.normal(keys[2 * i], (last, out_c), jnp.float32) / jnp.sqrt(float(last))
            b = jax.random.normal(keys[2 * i + 1], (out_c,), jnp.float32) * 0.1
            # nn.BatchNorm2d(out_c) in eval mode, default stats/affine, folded into W/b.
            gamma = jnp.ones((out_c,), jnp.float32)
            beta = jnp.zeros((out_c,), jnp.float32)
            mean = jnp.zeros((out_c,), jnp.float32)
            var = jnp.ones((out_c,), jnp.float32)
            scale = gamma / jnp.sqrt(var + eps)
            shift = beta - mean * scale
            w_eff = w * scale[None, :]
            b_eff = b * scale + shift
            # lane-pad channels (zeros): full MXU operands + unmasked lane-dense stores;
            # padded inputs/outputs stay exactly zero through the whole MLP.
            cin_pad = _round_up(last, LANE)
            cout_pad = _round_up(out_c, LANE)
            w_pad = jnp.zeros((cin_pad, cout_pad), jnp.float32).at[:last, :out_c].set(w_eff)
            b_pad = jnp.zeros((1, cout_pad), jnp.float32).at[0, :out_c].set(b_eff)
            self.weights.append(w_pad.astype(jnp.bfloat16))
            self.biases.append(b_pad)
            last = out_c
        self.c_out = last

    def __call__(self, xyz, points, fps_key):
        # xyz: [B, 3, N], points: [B, D, N] or None  (PyTorch NC(N) convention)
        xyz_t = jnp.transpose(xyz, (0, 2, 1))
        pts_t = None if points is None else jnp.transpose(points, (0, 2, 1))
        if self.group_all:
            new_xyz, new_points = sample_and_group_all(xyz_t, pts_t)
        else:
            new_xyz, new_points = sample_and_group(
                self.npoint, self.radius, self.nsample, xyz_t, pts_t, fps_key)
        B, S, K, C_in = new_points.shape
        feat_max = pointnet_sa_mlp_max(
            new_points.astype(jnp.float32), self.weights, self.biases, self.c_out)  # [B,S,C_out]
        new_points_out = jnp.transpose(feat_max, (0, 2, 1))                          # [B,C_out,S]
        idx_out = jnp.broadcast_to(jnp.arange(S)[None, None, :], (B, 1, S))
        return new_points_out, idx_out


# ----------------------------- Demo -----------------------------

if __name__ == "__main__":
    key = jax.random.PRNGKey(0)
    k_xyz, k_pts, k_param, k_fps = jax.random.split(key, 4)

    B, N, D = 2, 16, 4            # points feature channels D -> in_channel=D, MLP input = D+3
    npoint, radius, nsample = 8, 0.4, 8
    mlp = [16, 32]

    xyz = jax.random.uniform(k_xyz, (B, 3, N), dtype=jnp.float32)
    points = jax.random.normal(k_pts, (B, D, N), dtype=jnp.float32)

    sa = PointNetSetAbstraction(npoint, radius, nsample, D, mlp, group_all=False, key=k_param)
    new_points, idx = sa(xyz, points, k_fps)
    jax.block_until_ready(new_points)
    jax.block_until_ready(idx)

    assert new_points.shape == (B, mlp[-1], npoint), new_points.shape
    assert idx.shape == (B, 1, npoint), idx.shape
    print("KERNEL_OK")
</pallas_src>

<mosaic_0001>
module attributes {stable_mosaic.version = 11 : i64} {
  func.func @_sa_mlp_kernel(%arg0: i32, %arg1: i32, %arg2: memref<1x64x128xbf16, #tpu.memory_space<vmem>>, %arg3: memref<128x128xbf16, #tpu.memory_space<vmem>>, %arg4: memref<1x128xf32, #tpu.memory_space<vmem>>, %arg5: memref<128x128xbf16, #tpu.memory_space<vmem>>, %arg6: memref<1x128xf32, #tpu.memory_space<vmem>>, %arg7: memref<1x8x128xf32, #tpu.memory_space<vmem>>) attributes {dimension_semantics = [#tpu.dimension_semantics<parallel>, #tpu.dimension_semantics<parallel>], iteration_bounds = array<i64: 2, 1>, scalar_prefetch = 0 : i64, scratch_operands = 0 : i64, tpu.core_type = #tpu.core_type<tc>, window_params = [{transform_indices = @transform_0, window_bounds = array<i64: 1, 64, 128>}, {pipeline_mode = #tpu.pipeline_mode<synchronous>, transform_indices = @transform_1, window_bounds = array<i64: 128, 128>}, {pipeline_mode = #tpu.pipeline_mode<synchronous>, transform_indices = @transform_2, window_bounds = array<i64: 1, 128>}, {pipeline_mode = #tpu.pipeline_mode<synchronous>, transform_indices = @transform_3, window_bounds = array<i64: 128, 128>}, {pipeline_mode = #tpu.pipeline_mode<synchronous>, transform_indices = @transform_4, window_bounds = array<i64: 1, 128>}, {transform_indices = @transform_5, window_bounds = array<i64: 1, 8, 128>}]} {
    %c0 = arith.constant 0 : index
    %c0_0 = arith.constant 0 : index
    %c0_1 = arith.constant 0 : index
    %0 = vector.load %arg2[%c0, %c0_0, %c0_1] : memref<1x64x128xbf16, #tpu.memory_space<vmem>>, vector<1x64x128xbf16>
    %1 = vector.shape_cast %0 : vector<1x64x128xbf16> to vector<64x128xbf16>
    %c0_2 = arith.constant 0 : index
    %c0_3 = arith.constant 0 : index
    %2 = vector.load %arg3[%c0_2, %c0_3] : memref<128x128xbf16, #tpu.memory_space<vmem>>, vector<128x128xbf16>
    %c0_4 = arith.constant 0 : index
    %c0_5 = arith.constant 0 : index
    %3 = vector.load %arg4[%c0_4, %c0_5] : memref<1x128xf32, #tpu.memory_space<vmem>>, vector<1x128xf32>
    %cst = arith.constant dense<0.000000e+00> : vector<64x128xf32>
    %4 = tpu.matmul %1, %2, %cst {dimension_numbers = #tpu.dot_dimension_numbers<[1], [0], [0], [1], [0, 0, 1, 1], [], []>} : vector<64x128xbf16>, vector<128x128xbf16>, vector<64x128xf32> -> vector<64x128xf32>
    %5 = vector.broadcast %3 : vector<1x128xf32> to vector<64x128xf32>
    %6 = arith.addf %4, %5 : vector<64x128xf32>
    %cst_6 = arith.constant 0.000000e+00 : f32
    %7 = vector.broadcast %cst_6 : f32 to vector<64x128xf32>
    %8 = arith.maximumf %6, %7 : vector<64x128xf32>
    %9 = arith.truncf %8 : vector<64x128xf32> to vector<64x128xbf16>
    %c0_7 = arith.constant 0 : index
    %c0_8 = arith.constant 0 : index
    %10 = vector.load %arg5[%c0_7, %c0_8] : memref<128x128xbf16, #tpu.memory_space<vmem>>, vector<128x128xbf16>
    %c0_9 = arith.constant 0 : index
    %c0_10 = arith.constant 0 : index
    %11 = vector.load %arg6[%c0_9, %c0_10] : memref<1x128xf32, #tpu.memory_space<vmem>>, vector<1x128xf32>
    %cst_11 = arith.constant dense<0.000000e+00> : vector<64x128xf32>
    %12 = tpu.matmul %9, %10, %cst_11 {dimension_numbers = #tpu.dot_dimension_numbers<[1], [0], [0], [1], [0, 0, 1, 1], [], []>} : vector<64x128xbf16>, vector<128x128xbf16>, vector<64x128xf32> -> vector<64x128xf32>
    %13 = vector.broadcast %11 : vector<1x128xf32> to vector<64x128xf32>
    %14 = arith.addf %12, %13 : vector<64x128xf32>
    %cst_12 = arith.constant 0.000000e+00 : f32
    %15 = vector.broadcast %cst_12 : f32 to vector<64x128xf32>
    %16 = arith.maximumf %14, %15 : vector<64x128xf32>
    %17 = vector.shape_cast %16 : vector<64x128xf32> to vector<8x8x128xf32>
    %cst_13 = arith.constant dense<0xFF800000> : vector<8x128xf32>
    %18 = vector.multi_reduction <maximumf>, %17, %cst_13 [1] : vector<8x8x128xf32> to vector<8x128xf32>
    %c0_14 = arith.constant 0 : index
    %c0_15 = arith.constant 0 : index
    %c0_16 = arith.constant 0 : index
    %19 = vector.load %arg7[%c0_14, %c0_15, %c0_16] : memref<1x8x128xf32, #tpu.memory_space<vmem>>, vector<1x8x128xf32>
    %20 = vector.shape_cast %19 : vector<1x8x128xf32> to vector<8x128xf32>
    %21 = vector.shape_cast %18 : vector<8x128xf32> to vector<1x8x128xf32>
    tpu.vector_store %arg7[%c0_14, %c0_15, %c0_16], %21 {strides = array<i32>} : memref<1x8x128xf32, #tpu.memory_space<vmem>>, vector<1x8x128xf32>,
    return
  }
  func.func @transform_0(%arg0: i32, %arg1: i32) -> (i32, i32, i32) {
    %c0_i32 = arith.constant 0 : i32
    %c0_i32_0 = arith.constant 0 : i32
    return %arg0, %arg1, %c0_i32 : i32, i32, i32
  }
  func.func @transform_1(%arg0: i32, %arg1: i32) -> (i32, i32) {
    %c0_i32 = arith.constant 0 : i32
    %c0_i32_0 = arith.constant 0 : i32
    %c0_i32_1 = arith.constant 0 : i32
    return %c0_i32, %c0_i32_0 : i32, i32
  }
  func.func @transform_2(%arg0: i32, %arg1: i32) -> (i32, i32) {
    %c0_i32 = arith.constant 0 : i32
    %c0_i32_0 = arith.constant 0 : i32
    %c0_i32_1 = arith.constant 0 : i32
    return %c0_i32, %c0_i32_0 : i32, i32
  }
  func.func @transform_3(%arg0: i32, %arg1: i32) -> (i32, i32) {
    %c0_i32 = arith.constant 0 : i32
    %c0_i32_0 = arith.constant 0 : i32
    %c0_i32_1 = arith.constant 0 : i32
    return %c0_i32, %c0_i32_0 : i32, i32
  }
  func.func @transform_4(%arg0: i32, %arg1: i32) -> (i32, i32) {
    %c0_i32 = arith.constant 0 : i32
    %c0_i32_0 = arith.constant 0 : i32
    %c0_i32_1 = arith.constant 0 : i32
    return %c0_i32, %c0_i32_0 : i32, i32
  }
  func.func @transform_5(%arg0: i32, %arg1: i32) -> (i32, i32, i32) {
    %c0_i32 = arith.constant 0 : i32
    %c0_i32_0 = arith.constant 0 : i32
    return %arg0, %arg1, %c0_i32 : i32, i32, i32
  }
}

</mosaic_0001>

<bundles_post_ra>
// kernel: tpu_custom_call.1
= control target key start
LH: loop header
LB: loop body
LE: loop exit
PB: predicated region body
PF: predicated region fallthrough
CT: control target
= control target key end

     0   :  { %10 = vsyncpa [#allocation3], 0  ;;  %s1508_s0 = inlined_call_operand.hbm [shape: bf16[2,64,128], index: 0, kind: input, shape index: {}]   ;;  %s1509_s1 = inlined_call_operand.hbm [shape: bf16[128,128], index: 1, kind: input, shape index: {}]   ;;  %s1510_s2 = inlined_call_operand.vmem [shape: f32[1,128], index: 2, kind: input, shape index: {}]   ;;  %s1511_s3 = inlined_call_operand.hbm [shape: bf16[128,128], index: 3, kind: input, shape index: {}]   ;;  %s1512_s4 = inlined_call_operand.vmem [shape: f32[1,128], index: 4, kind: input, shape index: {}]   ;;  %s1513_s5 = inlined_call_operand.hbm [shape: f32[2,8,128], index: 5, kind: output, shape index: {}]  }
   0x1   :  { %12 = vsyncpa [#allocation3 + $0x1], 0 }
   0x2   :  { %13 = vsyncpa [#allocation6], 0 }
   0x3   :  { %14 = vsyncpa [#allocation4], 0 }
   0x4   :  { %16 = vsyncpa [#allocation4 + $0x1], 0  ;;  %s1232_s18 = smov 0   ;;  %s1234_s19 = smov 0  }
   0x5   :  { %s1236_s20 = smov 0   ;;  %s1238_s21 = smov 0  }
   0x6   :  { %s1240_s22 = smov 0   ;;  %s1242_s23 = smov 0  }
   0x7 LB: > { %s804_s24 = sadd.s32 4294967295, %s1194_s23   ;;  %s805_s25 = sadd.s32 4294967294, %s1194_s23   ;;  %s1194_s23 = sphi %s1242_s23, %s22_s23   ;;  %s1190_s22 = sphi %s1240_s22, %s1537_s22   ;;  %s1186_s21 = sphi %s1238_s21, %s1536_s21   ;;  %s1182_s20 = sphi %s1236_s20, %s1535_s20   ;;  %s1178_s19 = sphi %s1234_s19, %s1534_s19   ;;  %s1174_s18 = sphi %s1232_s18, %s1533_s18  }
   0x8   : > { %p56_p0 = scmp.ne.s32.totalorder %s1178_s19, %s1174_s18  ;;  %p1266_p1 = scmp.eq.s32.totalorder %s804_s24, 0 }
   0x9   : > { %p1270_p2 = scmp.eq.s32.totalorder %s804_s24, 1  ;;  %p172_p3 = scmp.eq.s32.totalorder %s805_s25, 1 }
   0xa   : > { %s1519_s26 = scalar_select %p1266_p1, 1, 0 }
   0xb   : > { %p1276_p4 = por %p1266_p1, %p56_p0  ;;  %p806_p5 = scmp.ge.s32.totalorder %s1194_s23, 1 }
   0xc   : > { %p1281_p6 = por %p172_p3, %p56_p0  ;;  %p179_p7 = scmp.lt.s32.totalorder %s1194_s23, 3 }
   0xd   : > { %s1521_s28 = scalar_select %p1276_p4, 1, 0 }
   0xe   : > { %s1522_s29 = scalar_select %p1281_p6, 1, 0 }
   0xf   : > { %p1286_p8 = pnand %p806_p5, %p179_p7  ;;  %s1196_s6 = smov [#allocation5]  }
  0x10   : > { %s191_s7 = sshll.u32 %s1196_s6, 4  ;;  %s1197_s9 = smov [#allocation7]   ;;  %s1290_s7 = int_to_ptr.vmem [resolvable:$true] %s191_s7 }
  0x11   : > { %p929_p9 = pneg %p1286_p8  ;;  %s207_s10 = sshll.u32 %s1197_s9, 4  ;;  %s1301_s10 = int_to_ptr.vmem [resolvable:$true] %s207_s10 }
  0x12   : > { %s1022_s13 = scalar_lea.hbm %s1509_s1, 1024 }
  0x13   : > { %p1297_p11 = pnand %p929_p9, %p1266_p1  ;;  %p1023_p12 = scmp.ne.s32.totalorder %s1509_s1, %s1022_s13 }
  0x14   : > { %p1029_p5 = scmp.lt.u32.totalorder %s1022_s13, %s1509_s1 }
  0x15   : > { %p1024_p13 = pneg %p1297_p11 }
  0x17   : > { %p1025_p0 = pnand %p1024_p13, %p1023_p12 }
  0x19   : > { %p1026_p3 = pneg %p1025_p0 }
  0x1b   : > { %p1031_p7 = pnand %p1029_p5, %p1026_p3 }
  0x1d   : > { %1034 = shalt.err (!%p1031_p7)
}
  0x1e   : > { %s1035_s24 = scalar_lea.vmem %s1290_s7, 1024  ;;  %p1043_p1 = scmp.lt.s32.totalorder %s1290_s7, %s1290_s7 }
  0x1f   : > { %p1036_p9 = scmp.ne.s32.totalorder %s1290_s7, %s1035_s24  ;;  %p1044_p12 = scmp.lt.s32.totalorder %s1035_s24, %s1035_s24 }
  0x21   : > { %p1038_p10 = pnand %p1036_p9, %p1024_p13  ;;  %p1045_p0 = por %p1044_p12, %p1043_p1 }
  0x23   : > { %p1039_p6 = pneg %p1038_p10 }
  0x25   : > { %p1046_p4 = pnand %p1045_p0, %p1039_p6 }
  0x27   : > { %1049 = shalt.err (!%p1046_p4)
}
  0x28   : > { %s1517_s25 = smov 64   ;;  %s1199_s6 = smov 4  }
  0x29   : > { %932 = dma.hbm_to_vmem [thread:$0]  (!%p1297_p11), %s1509_s1, 1024, %s1290_s7, [#allocation6], %s1517_s25, %s1517_s25, %s1199_s6  }
  0x2a   : > { %s1050_s14 = scalar_lea.hbm %s1511_s3, 1024 }
  0x2b   : > { %p1051_p1 = scmp.ne.s32.totalorder %s1511_s3, %s1050_s14  ;;  %p1057_p10 = scmp.lt.u32.totalorder %s1050_s14, %s1511_s3 }
  0x2d   : > { %p1053_p4 = pnand %p1051_p1, %p1024_p13 }
  0x2f   : > { %p1054_p6 = pneg %p1053_p4 }
  0x31   : > { %p1059_p3 = pnand %p1057_p10, %p1054_p6 }
  0x33   : > { %1062 = shalt.err (!%p1059_p3)
}
  0x34   : > { %s1063_s7 = scalar_lea.vmem %s1301_s10, 1024  ;;  %p1071_p12 = scmp.lt.s32.totalorder %s1301_s10, %s1301_s10 }
  0x35   : > { %p1064_p5 = scmp.ne.s32.totalorder %s1301_s10, %s1063_s7  ;;  %p1072_p0 = scmp.lt.s32.totalorder %s1063_s7, %s1063_s7 }
  0x37   : > { %p1066_p7 = pnand %p1064_p5, %p1024_p13  ;;  %p1073_p1 = por %p1072_p0, %p1071_p12 }
  0x39   : > { %p1067_p9 = pneg %p1066_p7 }
  0x3b   : > { %p1074_p4 = pnand %p1073_p1, %p1067_p9 }
  0x3d   : > { %1077 = shalt.err (!%p1074_p4)
}
  0x3e   : > { %935 = dma.hbm_to_vmem [thread:$0]  (!%p1297_p11), %s1511_s3, 1024, %s1301_s10, [#allocation6], %s1517_s25, %s1517_s25, %s1199_s6  }
  0x3f   : > { %s34_s8 = sadd.s32 1, %s1190_s22  ;;  %s43_s12 = sadd.s32 1, %s1182_s20 }
  0x40   : > { %p36_p13 = scmp.ge.s32.totalorder %s34_s8, 2  ;;  %p50_p6 = scmp.ne.s32.totalorder %s1182_s20, %s1178_s19 }
  0x41   : > { %p51_p10 = scmp.eq.s32.totalorder %s1194_s23, 0  ;;  %p946_p3 = scmp.lt.s32.totalorder %s1194_s23, 2 }
  0x42   : > { %s1539_s8 = smov (%p36_p13, %s34_s8), 0  ;;  %p1371_p7 = por %p1270_p2, %p50_p6 }
  0x43   : > { %p52_p5 = por %p51_p10, %p50_p6  ;;  %s38_s14 = ssub.s32 %s1190_s22, %s1539_s8 }
  0x44   : > { %s1525_s13 = scalar_select %p1371_p7, 1, 0 }
  0x45   : > { %s224_s15 = sand.u32 1, %s1182_s20   ;;  %p41_p9 = scmp.eq.s32.totalorder %s38_s14, 0 }
  0x46   : > { %s810_s10 = sshll.u32 %s224_s15, 5  ;;  %s844_s16 = sshll.u32 %s1190_s22, 9 }
  0x47   : > { %s1380_s17 = scalar_select %p41_p9, %s1182_s20, %s43_s12  }
  0x48   : > { %s1385_s9 = scalar_lea.hbm %s1508_s0, %s844_s16  ;;  %s228_s27 = scalar_lea.vmem [#allocation2], %s810_s10 }
  0x49   : > { %s237_s11 = sshll.u32 %s228_s27, 4  ;;  %p1389_p2 = pnand %p946_p3, %p52_p5  ;;  %s1393_s11 = int_to_ptr.vmem [resolvable:$true] %s237_s11 }
  0x4a   : > { %s1395_s12 = scalar_lea.sflag [#allocation3], %s224_s15  ;;  %s1078_s14 = scalar_lea.hbm %s1385_s9, 512 }
  0x4b   : > { %p1079_p11 = scmp.ne.s32.totalorder %s1385_s9, %s1078_s14  ;;  %p1080_p12 = pneg %p1389_p2 }
  0x4c   : > { %s1083_s24 = scalar_lea.hbm %s1508_s0, 1024  ;;  %p1084_p4 = scmp.lt.u32.totalorder %s1385_s9, %s1508_s0 }
  0x4d   : > { %p1081_p0 = pnand %p1080_p12, %p1079_p11  ;;  %p1085_p13 = scmp.lt.u32.totalorder %s1083_s24, %s1078_s14 }
  0x4e   : > { %p1087_p10 = scmp.lt.u32.totalorder %s1078_s14, %s1385_s9 }
  0x4f   : > { %p1082_p1 = pneg %p1081_p0  ;;  %p1086_p6 = por %p1085_p13, %p1084_p4 }
  0x51   : > { %p1088_p3 = por %p1087_p10, %p1086_p6 }
  0x53   : > { %p1089_p5 = pnand %p1088_p3, %p1082_p1 }
  0x55   : > { %1092 = shalt.err (!%p1089_p5)
}
  0x56   : > { %s1093_s15 = scalar_lea.vmem %s1393_s11, 512  ;;  %s1200_s10 = smov [#allocation2]  }
  0x57   : > { %p1094_p9 = scmp.ne.s32.totalorder %s1393_s11, %s1093_s15  ;;  %s1098_s16 = sshll.u32 %s1200_s10, 4  ;;  %s1099_s16 = int_to_ptr.vmem [resolvable:$false] %s1098_s16 }
  0x58   : > { %s1100_s7 = scalar_lea.vmem %s1099_s16, 1024  ;;  %p1101_p7 = scmp.lt.s32.totalorder %s1393_s11, %s1099_s16 }
  0x59   : > { %p1096_p11 = pnand %p1094_p9, %p1080_p12  ;;  %p1102_p4 = scmp.lt.s32.totalorder %s1100_s7, %s1093_s15 }
  0x5b   : > { %p1097_p0 = pneg %p1096_p11  ;;  %p1103_p13 = por %p1102_p4, %p1101_p7 }
  0x5d   : > { %p1104_p6 = pnand %p1103_p13, %p1097_p0 }
  0x5f   : > { %1107 = shalt.err (!%p1104_p6)
}
  0x60   : > { %s1527_s14 = smov 64   ;;  %249 = sbr.rel (%p1286_p8) target bundleno = 618 (0x26a), region = 40 }
  0x61   : > { %939 = dma.hbm_to_vmem [thread:$0]  (!%p1389_p2), %s1385_s9, 512, %s1393_s11, %s1395_s12, %s1527_s14, %s1527_s14, %s1199_s6  }
  0x62   : > { %s1429_s24 = sand.u32 (!%p1286_p8), 1, %s1178_s19   ;;  %p1528_p7 = scmp.ne.s32.totalorder (!%p1286_p8), %s1521_s28, 0 }
  0x63   : > { %s814_s27 = sshll.u32 (!%p1286_p8), %s1429_s24, 5  ;;  %s252_s15 = scalar_lea.sflag (!%p1286_p8), [#allocation3], %s1429_s24 }
  0x64   : > { %s1433_s10 = scalar_lea.vmem (!%p1286_p8), [#allocation2], %s814_s27 }
  0x67   : > { %1161 = dma.done.wait (%p1528_p7), %s252_s15, 512  }
  0x68   : > { %1163 = vsyncadd (%p1528_p7), %s252_s15, 4294966784  ;;  %p1529_p2 = scmp.ne.s32.totalorder %s1519_s26, 0 }
  0x6a   : > { %1165 = dma.done.wait (%p1529_p2), [#allocation6], 2048  }
  0x6b   : > { %1167 = vsyncadd (%p1529_p2), [#allocation6], 4294965248  ;;  %v1002_v0 = vld [vmem:[#allocation5] sm:$0xff]   ;;  %v1003_v1 = vld [vmem:[#allocation5 + $0x8] sm:$0xff]   ;;  %vm672_vm0 = vcmask 1041409   ;;  %vm674_vm1 = vcmask 1042434  }
  0x6c   : > { %869 = vmatprep.subr.bf16.mxu0 %v1002_v0  ;;  %v1004_v2 = vld [vmem:[#allocation5 + $0x10] sm:$0xff]   ;;  %v1005_v3 = vld [vmem:[#allocation5 + $0x18] sm:$0xff]   ;;  %v1010_v4 = vld [vmem:[%s1433_s10] sm:$0xff]   ;;  %vm676_vm2 = vcmask 1043459   ;;  %s817_s6 = sshll.u32 %s1429_s24, 3  ;;  %vm678_vm3 = vcmask 1044484  }
  0x6d   : > { %870 = vmatpush3.bf16.msra.mxu0 %v1002_v0  ;;  %885 = vmatprep.mubr.bf16.mxu0 %v1010_v4  ;;  %v1006_v5 = vld [vmem:[#allocation5 + $0x20] sm:$0xff]   ;;  %v1015_v7 = vld [vmem:[#allocation7 + $0x8] sm:$0xff]   ;;  %v1016_v9 = vld [vmem:[#allocation7 + $0x10] sm:$0xff]   ;;  %vm680_vm4 = vcmask 1045509   ;;  %vm682_vm5 = vcmask 1046534   ;;  %s841_s9 = sshll.u32 %s1186_s21, 7 }
  0x6e   : > { %871 = vmatprep.subr.bf16.mxu0 %v1003_v1  ;;  %v1014_v6 = vld [vmem:[#allocation7] sm:$0xff]   ;;  %v1007_v8 = vld [vmem:[#allocation5 + $0x28] sm:$0xff]   ;;  %v1008_v10 = vld [vmem:[#allocation5 + $0x30] sm:$0xff]   ;;  %s289_s11 = scalar_lea.vmem [#allocation8], %s817_s6  ;;  %vm684_vm6 = vcmask 1047559   ;;  %s1459_s14 = scalar_lea.hbm %s1513_s5, %s841_s9 }
  0x6f   : > { %893 = vmatprep.subr.bf16.mxu1 %v1014_v6  ;;  %v1017_v11 = vld [vmem:[#allocation7 + $0x18] sm:$0xff]   ;;  %v1018_v13 = vld [vmem:[#allocation7 + $0x20] sm:$0xff]   ;;  %v1019_v14 = vld [vmem:[#allocation7 + $0x28] sm:$0xff]   ;;  %s703_s12 = sshll.u32 %s289_s11, 4  ;;  %s689_s21 = scalar_lea.sflag [#allocation4], %s1429_s24  ;;  %s1461_s12 = int_to_ptr.vmem [resolvable:$true] %s703_s12 }
  0x70   : > { %894 = vmatpush3.bf16.msra.mxu1 %v1014_v6  ;;  %v1009_v12 = vld [vmem:[#allocation5 + $0x38] sm:$0xff]   ;;  %v1011_v15 = vld [vmem:[%s1433_s10 + $0x8] sm:$0xff]   ;;  %v1012_v16 = vld [vmem:[%s1433_s10 + $0x10] sm:$0xff]   ;;  %s1108_s27 = scalar_lea.vmem %s1461_s12, 128  ;;  %p1530_p12 = scmp.ne.s32.totalorder %s1525_s13, 0 }
  0x71   : > { %872 = vmatpush3.bf16.msra.mxu0 %v1003_v1  ;;  %895 = vmatprep.subr.bf16.mxu1 %v1015_v7  ;;  %v1013_v17 = vld [vmem:[%s1433_s10 + $0x18] sm:$0xff]   ;;  %v1020_v18 = vld [vmem:[#allocation7 + $0x30] sm:$0xff]   ;;  %v818_v20 = vld [vmem:[%s1510_s2] ss:$0 sm:$0xff]  ;;  %p1109_p8 = scmp.ne.s32.totalorder %s1461_s12, %s1108_s27  ;;  %s1201_s15 = smov [#allocation8]  }
  0x72   : > { %873 = vmatprep.subr.bf16.mxu0 %v1004_v2  ;;  %v1021_v19 = vld [vmem:[#allocation7 + $0x38] sm:$0xff]   ;;  %v831_v49 = vld [vmem:[%s1512_s4] ss:$0 sm:$0xff]  ;;  %s1112_s10 = sshll.u32 %s1201_s15, 4  ;;  %s1113_s10 = int_to_ptr.vmem [resolvable:$false] %s1112_s10 }
  0x73   : > { %p1110_p1 = pnand %p1109_p8, %p1530_p12  ;;  %s1114_s26 = scalar_lea.vmem %s1113_s10, 256 }
  0x74   : > { %896 = vmatpush3.bf16.msra.mxu1 %v1015_v7  ;;  %p1115_p3 = scmp.lt.s32.totalorder %s1461_s12, %s1113_s10  ;;  %p1116_p5 = scmp.lt.s32.totalorder %s1114_s26, %s1108_s27 }
  0x75   : > { %874 = vmatpush3.bf16.msra.mxu0 %v1004_v2  ;;  %897 = vmatprep.subr.bf16.mxu1 %v1016_v9  ;;  %p1111_p10 = pneg %p1110_p1 }
  0x76   : > { %875 = vmatprep.subr.bf16.mxu0 %v1005_v3  ;;  %p1117_p9 = por %p1116_p5, %p1115_p3 }
  0x78   : > { %898 = vmatpush3.bf16.msra.mxu1 %v1016_v9  ;;  %p1118_p11 = pnand %p1117_p9, %p1111_p10 }
  0x79   : > { %876 = vmatpush3.bf16.msra.mxu0 %v1005_v3  ;;  %899 = vmatprep.subr.bf16.mxu1 %v1017_v11 }
  0x7a   : > { %877 = vmatprep.subr.bf16.mxu0 %v1006_v5 }
  0x7c   : > { %900 = vmatpush3.bf16.msra.mxu1 %v1017_v11 }
  0x7d   : > { %878 = vmatpush3.bf16.msra.mxu0 %v1006_v5  ;;  %901 = vmatprep.subr.bf16.mxu1 %v1018_v13 }
  0x7e   : > { %879 = vmatprep.subr.bf16.mxu0 %v1007_v8 }
  0x80   : > { %902 = vmatpush3.bf16.msra.mxu1 %v1018_v13 }
  0x81   : > { %880 = vmatpush3.bf16.msra.mxu0 %v1007_v8  ;;  %903 = vmatprep.subr.bf16.mxu1 %v1019_v14 }
  0x82   : > { %881 = vmatprep.subr.bf16.mxu0 %v1008_v10 }
  0x84   : > { %904 = vmatpush3.bf16.msra.mxu1 %v1019_v14 }
  0x85   : > { %882 = vmatpush3.bf16.msra.mxu0 %v1008_v10  ;;  %905 = vmatprep.subr.bf16.mxu1 %v1020_v18 }
  0x86   : > { %883 = vmatprep.subr.bf16.mxu0 %v1009_v12 }
  0x88   : > { %906 = vmatpush3.bf16.msra.mxu1 %v1020_v18 }
  0x89   : > { %884 = vmatpush3.bf16.msra.mxu0 %v1009_v12  ;;  %907 = vmatprep.subr.bf16.mxu1 %v1021_v19 }
  0x8c   : > { %886 = vmatmul.mubr.bf16.vlgmr.msra.gmra.mrb[0].mxu0 %v1011_v15  ;;  %908 = vmatpush3.bf16.msra.mxu1 %v1021_v19 }
  0x8d   : > { %889 = vmatprep.mubr.bf16.mxu0 %v1012_v16 }
  0x94   : > { %890 = vmatmul.mubr.bf16.gmra.mrb[4].mxu0 %v1013_v17 }
 0x15f   : > { %v887_v21 = vpop.f32.mrb[0].mxu0 }
 0x160   : > { %v438_v22 = vadd.f32 %v887_v21, %v818_v20  ;;  %v429_v23 = vpop.f32.mrb[1].mxu0 }
 0x161   : > { %v430_v24 = vadd.f32 %v818_v20, %v429_v23  ;;  %v888_v25 = vpop.f32.mrb[2].mxu0 }
 0x162   : > { %v441_v26 = vadd.f32 %v888_v25, %v818_v20  ;;  %v432_v27 = vpop.f32.mrb[3].mxu0  ;;  %v462_v29 = vmax.f32 %v438_v22, 0.0 }
 0x163   : > { %v433_v28 = vadd.f32 %v818_v20, %v432_v27  ;;  %v460_v31 = vmax.f32 %v430_v24, 0.0 }
 0x164   : > { %v463_v30 = vmax.f32 %v441_v26, 0.0 }
 0x165   : > { %v461_v32 = vmax.f32 %v433_v28, 0.0 }
 0x166   : > { %v469_v33 = vpack.c.bf16 %v463_v30, %v462_v29 }
 0x167   : > { %v891_v34 = vpop.f32.mrb[4].mxu0  ;;  %v468_v35 = vpack.c.bf16 %v461_v32, %v460_v31 }
 0x168   : > { %v454_v36 = vadd.f32 %v891_v34, %v818_v20  ;;  %v445_v37 = vpop.f32.mrb[5].mxu0 }
 0x169   : > { %v446_v38 = vadd.f32 %v818_v20, %v445_v37  ;;  %v892_v39 = vpop.f32.mrb[6].mxu0  ;;  %909 = vmatprep.mubr.bf16.mxu1 %v468_v35 }
 0x16a   : > { %v457_v40 = vadd.f32 %v892_v39, %v818_v20  ;;  %v448_v41 = vpop.f32.mrb[7].mxu0  ;;  %910 = vmatmul.mubr.bf16.vlgmr.msra.gmra.mrb[0].mxu1 %v469_v33  ;;  %v466_v43 = vmax.f32 %v454_v36, 0.0 }
 0x16b   : > { %v449_v42 = vadd.f32 %v818_v20, %v448_v41  ;;  %v464_v45 = vmax.f32 %v446_v38, 0.0 }
 0x16c   : > { %v467_v44 = vmax.f32 %v457_v40, 0.0 }
 0x16d   : > { %v465_v46 = vmax.f32 %v449_v42, 0.0 }
 0x16e   : > { %v471_v47 = vpack.c.bf16 %v467_v44, %v466_v43 }
 0x16f   : > { %v470_v48 = vpack.c.bf16 %v465_v46, %v464_v45 }
 0x171   : > { %913 = vmatprep.mubr.bf16.mxu1 %v470_v48 }
 0x172   : > { %914 = vmatmul.mubr.bf16.gmra.mrb[4].mxu1 %v471_v47 }
 0x23d   : > { %v911_v50 = vpop.f32.mrb[0].mxu1 }
 0x23e   : > { %v586_v51 = vadd.f32 %v911_v50, %v831_v49  ;;  %v577_v52 = vpop.f32.mrb[1].mxu1 }
 0x23f   : > { %v578_v53 = vadd.f32 %v831_v49, %v577_v52  ;;  %v912_v54 = vpop.f32.mrb[2].mxu1 }
 0x240   : > { %v610_v55 = vmax.f32 %v586_v51, 0.0  ;;  %v589_v56 = vadd.f32 %v912_v54, %v831_v49  ;;  %v580_v57 = vpop.f32.mrb[3].mxu1 }
 0x241   : > { %v608_v58 = vmax.f32 %v578_v53, 0.0  ;;  %v581_v59 = vadd.f32 %v831_v49, %v580_v57 }
 0x242   : > { %v628_v60 = vrot.slane %v610_v55, 4  ;;  %v611_v61 = vmax.f32 %v589_v56, 0.0 }
 0x243   : > { %v616_v62 = vrot.slane %v608_v58, 4  ;;  %v609_v63 = vmax.f32 %v581_v59, 0.0 }
 0x244   : > { %v629_v0 = vmax.f32 %v610_v55, %v628_v60  ;;  %v634_v1 = vrot.slane %v611_v61, 4 }
 0x245   : > { %v617_v2 = vmax.f32 %v608_v58, %v616_v62  ;;  %v622_v3 = vrot.slane %v609_v63, 4  ;;  %v915_v4 = vpop.f32.mrb[4].mxu1 }
 0x246   : > { %v630_v5 = vrot.slane %v629_v0, 2  ;;  %v635_v6 = vmax.f32 %v611_v61, %v634_v1  ;;  %v602_v7 = vadd.f32 %v915_v4, %v831_v49  ;;  %v593_v8 = vpop.f32.mrb[5].mxu1 }
 0x247   : > { %v618_v9 = vrot.slane %v617_v2, 2  ;;  %v623_v10 = vmax.f32 %v609_v63, %v622_v3  ;;  %v594_v11 = vadd.f32 %v831_v49, %v593_v8  ;;  %v916_v12 = vpop.f32.mrb[6].mxu1 }
 0x248   : > { %v631_v13 = vmax.f32 %v629_v0, %v630_v5  ;;  %v636_v14 = vrot.slane %v635_v6, 2  ;;  %v614_v15 = vmax.f32 %v602_v7, 0.0  ;;  %v605_v16 = vadd.f32 %v916_v12, %v831_v49  ;;  %v596_v17 = vpop.f32.mrb[7].mxu1 }
 0x249   : > { %v619_v18 = vmax.f32 %v617_v2, %v618_v9  ;;  %v624_v19 = vrot.slane %v623_v10, 2  ;;  %v612_v20 = vmax.f32 %v594_v11, 0.0  ;;  %v597_v21 = vadd.f32 %v831_v49, %v596_v17 }
 0x24a   : > { %v637_v22 = vmax.f32 %v635_v6, %v636_v14  ;;  %v652_v23 = vrot.slane %v614_v15, 4  ;;  %v615_v24 = vmax.f32 %v605_v16, 0.0  ;;  %v632_v29 = vrot.slane %v631_v13, 1 }
 0x24b   : > { %v620_v25 = vrot.slane %v619_v18, 1  ;;  %v625_v26 = vmax.f32 %v623_v10, %v624_v19  ;;  %v640_v27 = vrot.slane %v612_v20, 4  ;;  %v613_v28 = vmax.f32 %v597_v21, 0.0 }
 0x24c   : > { %v653_v30 = vmax.f32 %v614_v15, %v652_v23  ;;  %v658_v31 = vrot.slane %v615_v24, 4  ;;  %v638_v32 = vrot.slane %v637_v22, 1  ;;  %v633_v42 = vmax.f32 %v631_v13, %v632_v29 }
 0x24d   : > { %v626_v33 = vrot.slane %v625_v26, 1  ;;  %v641_v34 = vmax.f32 %v612_v20, %v640_v27  ;;  %v646_v35 = vrot.slane %v613_v28, 4  ;;  %v621_v38 = vmax.f32 %v619_v18, %v620_v25 }
 0x24e   : > { %v654_v36 = vrot.slane %v653_v30, 2  ;;  %v659_v37 = vmax.f32 %v615_v24, %v658_v31  ;;  %v639_v45 = vmax.f32 %v637_v22, %v638_v32 }
 0x24f   : > { %v627_v39 = vmax.f32 %v625_v26, %v626_v33  ;;  %v642_v40 = vrot.slane %v641_v34, 2  ;;  %v647_v41 = vmax.f32 %v613_v28, %v646_v35 }
 0x250   : > { %v655_v43 = vmax.f32 %v653_v30, %v654_v36  ;;  %v660_v44 = vrot.slane %v659_v37, 2 }
 0x251   : > { %v673_v46 = vsel %vm672_vm0, %v627_v39, %v621_v38  ;;  %v643_v47 = vmax.f32 %v641_v34, %v642_v40  ;;  %v648_v48 = vrot.slane %v647_v41, 2 }
 0x252   : > { %v675_v49 = vsel %vm674_vm1, %v633_v42, %v673_v46  ;;  %v661_v50 = vmax.f32 %v659_v37, %v660_v44  ;;  %v656_v54 = vrot.slane %v655_v43, 1 }
 0x253   : > { %v644_v51 = vrot.slane %v643_v47, 1  ;;  %v677_v52 = vsel %vm676_vm2, %v639_v45, %v675_v49  ;;  %v649_v53 = vmax.f32 %v647_v41, %v648_v48 }
 0x254   : > { %v662_v56 = vrot.slane %v661_v50, 1  ;;  %v657_v60 = vmax.f32 %v655_v43, %v656_v54 }
 0x255   : > { %v645_v55 = vmax.f32 %v643_v47, %v644_v51  ;;  %v650_v57 = vrot.slane %v649_v53, 1 }
 0x256   : > { %v663_v61 = vmax.f32 %v661_v50, %v662_v56 }
 0x257   : > { %v679_v58 = vsel %vm678_vm3, %v645_v55, %v677_v52  ;;  %v651_v59 = vmax.f32 %v649_v53, %v650_v57 }
 0x259   : > { %v681_v62 = vsel %vm680_vm4, %v651_v59, %v679_v58 }
 0x25a   : > { %v683_v63 = vsel %vm682_vm5, %v657_v60, %v681_v62 }
 0x25b   : > { %v685_v0 = vsel %vm684_vm6, %v663_v61, %v683_v63 }
 0x25c   : > { %687 = vst [vmem:[%s289_s11] sm:$0xff] %v685_v0 }
 0x25d   : > { %1121 = shalt.err (!%p1118_p11)
}
 0x25e   : > { %s1122_s24 = scalar_lea.hbm %s1459_s14, 128  ;;  %s1126_s25 = scalar_lea.hbm %s1513_s5, 256 }
 0x25f   : > { %p1123_p0 = scmp.ne.s32.totalorder %s1459_s14, %s1122_s24  ;;  %p1127_p6 = scmp.lt.u32.totalorder %s1459_s14, %s1513_s5 }
 0x260   : > { %p1128_p7 = scmp.lt.u32.totalorder %s1126_s25, %s1122_s24  ;;  %p1130_p8 = scmp.lt.u32.totalorder %s1122_s24, %s1459_s14 }
 0x261   : > { %p1124_p4 = pnand %p1123_p0, %p1530_p12 }
 0x262   : > { %p1129_p2 = por %p1128_p7, %p1127_p6 }
 0x263   : > { %p1125_p13 = pneg %p1124_p4 }
 0x264   : > { %p1131_p1 = por %p1130_p8, %p1129_p2 }
 0x266   : > { %p1132_p10 = pnand %p1131_p1, %p1125_p13 }
 0x268   : > { %1135 = shalt.err (!%p1132_p10)
}
 0x269   : > { %927 = dma.vmem_to_hbm [thread:$0]  (%p1530_p12), %s1461_s12, 128, %s1459_s14, %s689_s21  }
 0x26a PF: > { %s715_s11 = sand.u32 1, %s1174_s18   ;;  %p1531_p3 = scmp.ne.s32.totalorder %s1522_s29, 0 }
 0x26b   : > { %p1532_p5 = scmp.ge.s32.totalorder %s1194_s23, 2  ;;  %s716_s16 = scalar_lea.sflag [#allocation4], %s715_s11 }
 0x26d   : > { %p941_p9 = pnand %p1532_p5, %p1531_p3 }
 0x26f   : > { %1169 = dma.done.wait (!%p941_p9), %s716_s16, 128  }
 0x270   : > { %1171 = vsyncadd (!%p941_p9), %s716_s16, 4294967168  ;;  %s22_s23 = sadd.s32 1, %s1194_s23   ;;  %s1533_s18 = smov %s1178_s19 }
 0x271   : > { %p19_p11 = scmp.ge.s32.totalorder %s22_s23, 4   ;;  %s1534_s19 = smov %s1182_s20 }
 0x272   : > { %s1535_s20 = smov %s1380_s17  ;;  %s1536_s21 = smov %s1190_s22 }
 0x273   : > { %s1537_s22 = smov %s1539_s8  ;;  %21 = sbr.rel (!%p19_p11) target bundleno = 7 (0x7), region = 93 }
 0x27a   :  { %721 = vsyncpa [#allocation3], 1 }
 0x27b   :  { %723 = vsyncpa [#allocation3 + $0x1], 1 }
 0x27c   :  { %724 = vsyncpa [#allocation6], 1 }
 0x27d   :  { %725 = vsyncpa [#allocation4], 1 }
 0x27e   :  { %727 = vsyncpa [#allocation4 + $0x1], 1 }

</bundles_post_ra>
